<compile_context>
chip_gen: v5e
topology: v5e:2x2
jax: 0.10.0
libtpu: 0.0.40
codegen_flags: <defaults>
</compile_context>

<pallas_src>
import functools

import jax
import jax.numpy as jnp
from jax import lax
from jax.experimental import pallas as pl
from jax.experimental.pallas import tpu as pltpu


def _rspace_kernel(pairs_ref, charges_t_ref, out_ref, iota_ref, *, scale: float):
    """One pair-tile of the real-space sum.

    pairs_ref:     (3, TP) int32  row 0: gather atom index (src),
                                  row 1: scatter atom index (dst),
                                  row 2: pair distance (f32 bits).
                                  Padded pairs: index -1, distance 1.0.
    charges_t_ref: (C, N)  f32    charges, atoms lane-dense.
    out_ref:       (C, N)  f32    per-atom potentials; resident across the
                                  pair axis and used directly as accumulator.
    iota_ref:      (N, TP) int32  scratch holding the atom-row iota (hoisted).
    """
    step = pl.program_id(1)

    @pl.when(step == 0)
    def _init():
        out_ref[...] = jnp.zeros_like(out_ref)
        iota_ref[...] = lax.broadcasted_iota(jnp.int32, iota_ref.shape, 0)

    pairs = pairs_ref[...]                                    # single fused load
    src = pairs[0:1, :]                                       # (1, TP) int32
    dst = pairs[1:2, :]                                       # (1, TP) int32
    dist = pltpu.bitcast(pairs[2:3, :], jnp.float32)          # (1, TP) f32

    # Bare Coulomb 1/r: EUP approximate reciprocal + one Newton-Raphson step
    # (~1e-7 relative error, well within f32 tolerance).
    inv = pl.reciprocal(dist, approx=True)
    inv = inv * (2.0 - dist * inv)
    # Fold prefactor * 0.5 into the O(TP) pair weights (cheaper than scaling
    # the dense (C, N) block at the end).
    inv = inv * scale

    # Lane-dense one-hots.  Padded pairs carry index -1 -> all-zero columns.
    atom_rows = iota_ref[...]                                 # (N, TP)
    gather_oh = (src == atom_rows).astype(jnp.float32)        # (N, TP)
    scatter_oh = (dst == atom_rows).astype(jnp.float32)       # (N, TP)

    # Gather q[src] via MXU: (C, N) @ (N, TP) -> (C, TP), weight by scale/r.
    gathered = jnp.dot(charges_t_ref[...], gather_oh,
                       preferred_element_type=jnp.float32)    # (C, TP)
    contrib = gathered * inv                                  # (C, TP)

    # Scatter-add onto atoms dst via MXU: (C, TP) x (N, TP)^T -> (C, N),
    # accumulated directly in the resident output block.
    out_ref[...] += lax.dot_general(
        contrib, scatter_oh,
        dimension_numbers=(((1,), (1,)), ((), ())),
        preferred_element_type=jnp.float32)


def _round_up(x: int, m: int) -> int:
    return ((x + m - 1) // m) * m


def _vmem_need_bytes(c_pad: int, n_pad: int, tp: int) -> int:
    """Rough per-step VMEM requirement (with 1.5x margin)."""
    dense = 4 * c_pad * n_pad * 4          # resident out + charges (+ slack)
    pair_bufs = 2 * 8 * tp * 4             # (3 -> 8 sublane padded, TP) x 2 bufs
    iota = n_pad * tp * 4                  # hoisted iota scratch
    onehots = 2 * n_pad * tp * 4           # transient gather/scatter one-hots
    small = 2 * c_pad * tp * 4             # gathered + contrib
    return int(1.5 * (dense + pair_bufs + iota + onehots + small))


def _vmem_capacity_bytes() -> int:
    try:
        return int(pltpu.get_tpu_info().vmem_capacity_bytes)
    except Exception:
        return 64 * 1024 * 1024            # safe floor (v7x per-TC VMEM)


def _detect_num_splits() -> int:
    """2 on v7x (2 TensorCores/chip), 1 on v5e/v6e."""
    try:
        kind = jax.devices()[0].device_kind.lower()
    except Exception:
        return 1
    return 2 if ("v7" in kind or "7x" in kind) else 1


def calculator_forward(charges, cell, positions, neighbor_indices,
                       neighbor_distances, *, full_neighbor_list=False,
                       prefactor=1.0, pair_tile=1024, num_splits=None):
    """JAX/Pallas equivalent of Calculator.forward with smearing=None
    (real-space branch only; `cell` and `positions` are unused there,
    matching the PyTorch reference)."""
    del cell, positions  # only needed by the (abstract) k-space branch
    charges = charges.astype(jnp.float32)
    n_atoms, n_channels = charges.shape

    nbr = neighbor_indices.astype(jnp.int32)
    dist = neighbor_distances.reshape(-1).astype(jnp.float32)
    atom_is = nbr[:, 0]
    atom_js = nbr[:, 1]

    if full_neighbor_list:
        src, dst, d = atom_js, atom_is, dist
    else:
        # Fuse the mirrored half-list contributions into one pair stream of
        # length 2P so every tile runs exactly one gather and one scatter
        # matmul.
        src = jnp.concatenate([atom_js, atom_is])
        dst = jnp.concatenate([atom_is, atom_js])
        d = jnp.concatenate([dist, dist])

    p_eff = int(src.shape[0])

    # Lane/sublane-align the dense block: atoms -> multiple of 128 (lanes),
    # channels -> multiple of 8 (sublanes) => unmasked vst on the output path.
    n_pad = _round_up(max(n_atoms, 1), 128)
    c_pad = _round_up(max(n_channels, 1), 8)

    # Leading parallel split (v7x megacore); 1 elsewhere.
    splits = int(num_splits) if num_splits is not None else _detect_num_splits()
    splits = max(1, splits)

    # Pick the pair tile from the per-generation VMEM budget.
    vmem_cap = _vmem_capacity_bytes()
    budget = int(0.6 * vmem_cap)
    tp = max(128, (int(pair_tile) // 128) * 128)
    while tp > 128 and _vmem_need_bytes(c_pad, n_pad, tp) > budget:
        tp -= 128
    per_split = max(1, (p_eff + splits - 1) // splits)
    tp = max(128, min(tp, _round_up(per_split, 128)))

    p_split = _round_up(per_split, tp)
    total = splits * p_split
    pad = total - p_eff

    # Pad: index -1 never matches the atom iota -> zero one-hot columns;
    # distance 1.0 keeps the reciprocal finite, so padded pairs contribute 0.
    src_p = jnp.pad(src, (0, pad), constant_values=-1)
    dst_p = jnp.pad(dst, (0, pad), constant_values=-1)
    d_p = jnp.pad(d, (0, pad), constant_values=1.0)
    d_bits = lax.bitcast_convert_type(d_p, jnp.int32)

    # Fuse src / dst / dist into one (splits, 3, p_split) stream -> 1 DMA/step.
    pairs = jnp.stack([src_p, dst_p, d_bits], axis=0)          # (3, total)
    pairs = pairs.reshape(3, splits, p_split).transpose(1, 0, 2)

    charges_t = jnp.zeros((c_pad, n_pad), jnp.float32)
    charges_t = charges_t.at[:n_channels, :n_atoms].set(charges.T)

    num_steps = p_split // tp
    scale = float(prefactor) * 0.5

    kernel = functools.partial(_rspace_kernel, scale=scale)

    need = _vmem_need_bytes(c_pad, n_pad, tp)
    vmem_limit = int(min(max(need, 32 * 1024 * 1024),
                         max(32 * 1024 * 1024, vmem_cap - 16 * 1024 * 1024)))

    flops = 4 * c_pad * n_pad * total              # gather + scatter matmuls
    bytes_accessed = 4 * (int(pairs.size) + int(charges_t.size)
                          + splits * c_pad * n_pad)

    out = pl.pallas_call(
        kernel,
        out_shape=jax.ShapeDtypeStruct((splits, c_pad, n_pad), jnp.float32),
        grid_spec=pltpu.PrefetchScalarGridSpec(
            num_scalar_prefetch=0,
            grid=(splits, num_steps),
            in_specs=[
                # fused pair stream, leading split dim squeezed out
                pl.BlockSpec((None, 3, tp), lambda s, p: (s, 0, p)),
                # charges, loop-invariant dense block
                pl.BlockSpec((c_pad, n_pad), lambda s, p: (0, 0)),
            ],
            out_specs=pl.BlockSpec((None, c_pad, n_pad), lambda s, p: (s, 0, 0)),
            scratch_shapes=[pltpu.VMEM((n_pad, tp), jnp.int32)],  # hoisted iota
        ),
        compiler_params=pltpu.CompilerParams(
            dimension_semantics=("parallel", "arbitrary"),
            vmem_limit_bytes=vmem_limit,
        ),
        cost_estimate=pl.CostEstimate(
            flops=int(flops),
            transcendentals=int(total),
            bytes_accessed=int(bytes_accessed),
        ),
    )(pairs, charges_t)

    # Combine the per-core slabs, drop padding, back to (N, C).
    return out.sum(axis=0)[:n_channels, :n_atoms].T


def _reference_forward(charges, neighbor_indices, neighbor_distances,
                       *, full_neighbor_list=False, prefactor=1.0):
    """Pure-JAX reference mirroring Calculator._compute_rspace (f32)."""
    pot_bare = 1.0 / neighbor_distances
    atom_is = neighbor_indices[:, 0]
    atom_js = neighbor_indices[:, 1]
    contrib_is = charges[atom_js] * pot_bare[:, None]
    potential = jnp.zeros_like(charges).at[atom_is].add(contrib_is)
    if not full_neighbor_list:
        contrib_js = charges[atom_is] * pot_bare[:, None]
        potential = potential.at[atom_js].add(contrib_js)
    return prefactor * potential / 2.0


if __name__ == "__main__":
    key = jax.random.PRNGKey(0)
    k1, k2, k3, k4, k5 = jax.random.split(key, 5)

    n_atoms = 32      # number of particles
    n_channels = 4    # charge channels
    n_pairs = 200     # half neighbor list pairs (-> 400 fused)

    charges = jax.random.normal(k1, (n_atoms, n_channels), dtype=jnp.float32)
    positions = jax.random.uniform(k2, (n_atoms, 3), dtype=jnp.float32) * 4.0
    cell = jnp.eye(3, dtype=jnp.float32) * 4.0

    ii = jax.random.randint(k3, (n_pairs,), 0, n_atoms, dtype=jnp.int32)
    jj = jax.random.randint(k4, (n_pairs,), 0, n_atoms, dtype=jnp.int32)
    jj = jnp.where(jj == ii, (jj + 1) % n_atoms, jj)
    neighbor_indices = jnp.stack([ii, jj], axis=1).astype(jnp.int32)
    neighbor_distances = (
        0.5 + jax.random.uniform(k5, (n_pairs,), dtype=jnp.float32) * 3.0)

    prefactor = 0.7
    ref = _reference_forward(
        charges, neighbor_indices, neighbor_distances,
        full_neighbor_list=False, prefactor=prefactor)

    # 1) default tile (single grid step at this size)
    out = calculator_forward(
        charges, cell, positions, neighbor_indices, neighbor_distances,
        full_neighbor_list=False, prefactor=prefactor)
    out = jax.block_until_ready(out)
    assert out.shape == (n_atoms, n_channels)
    assert jnp.allclose(out, ref, atol=1e-4, rtol=1e-4), (
        f"max abs err = {jnp.max(jnp.abs(out - ref))}")

    # 2) small tile -> exercises the multi-step accumulation path
    out_small = calculator_forward(
        charges, cell, positions, neighbor_indices, neighbor_distances,
        full_neighbor_list=False, prefactor=prefactor, pair_tile=128)
    out_small = jax.block_until_ready(out_small)
    assert jnp.allclose(out_small, ref, atol=1e-4, rtol=1e-4), (
        f"max abs err = {jnp.max(jnp.abs(out_small - ref))}")

    # 3) full neighbor list (both directions listed explicitly) must agree
    full_idx = jnp.concatenate([neighbor_indices, neighbor_indices[:, ::-1]], 0)
    full_dist = jnp.concatenate([neighbor_distances, neighbor_distances])
    out_full = calculator_forward(
        charges, cell, positions, full_idx, full_dist,
        full_neighbor_list=True, prefactor=prefactor)
    out_full = jax.block_until_ready(out_full)
    assert jnp.allclose(out_full, ref, atol=1e-4, rtol=1e-4), (
        f"max abs err = {jnp.max(jnp.abs(out_full - ref))}")

    # 4) explicit 2-way split (v7x megacore path) is correct on any chip
    out_split = calculator_forward(
        charges, cell, positions, neighbor_indices, neighbor_distances,
        full_neighbor_list=False, prefactor=prefactor,
        pair_tile=128, num_splits=2)
    out_split = jax.block_until_ready(out_split)
    assert jnp.allclose(out_split, ref, atol=1e-4, rtol=1e-4), (
        f"max abs err = {jnp.max(jnp.abs(out_split - ref))}")

    print("KERNEL_OK")
</pallas_src>

<mosaic_0001>
module attributes {stable_mosaic.version = 11 : i64} {
  func.func @_rspace_kernel(%arg0: i32, %arg1: i32, %arg2: memref<1x3x512xi32, #tpu.memory_space<vmem>>, %arg3: memref<8x128xf32, #tpu.memory_space<vmem>>, %arg4: memref<1x8x128xf32, #tpu.memory_space<vmem>>, %arg5: memref<128x512xi32, #tpu.memory_space<vmem>>) attributes {dimension_semantics = [#tpu.dimension_semantics<parallel>, #tpu.dimension_semantics<arbitrary>], iteration_bounds = array<i64: 1, 1>, scalar_prefetch = 0 : i64, scratch_operands = 1 : i64, tpu.core_type = #tpu.core_type<tc>, window_params = [{transform_indices = @transform_0, window_bounds = array<i64: 1, 3, 512>}, {pipeline_mode = #tpu.pipeline_mode<synchronous>, transform_indices = @transform_1, window_bounds = array<i64: 8, 128>}, {transform_indices = @transform_2, window_bounds = array<i64: 1, 8, 128>}]} {
    %c0_i32 = arith.constant 0 : i32
    %0 = arith.cmpi eq, %arg1, %c0_i32 : i32
    %1 = arith.extui %0 : i1 to i32
    %c0_i32_0 = arith.constant 0 : i32
    %2 = arith.cmpi ne, %1, %c0_i32_0 : i32
    scf.if %2 {
      %cst_16 = arith.constant 0.000000e+00 : f32
      %36 = vector.broadcast %cst_16 : f32 to vector<8x128xf32>
      %c0_17 = arith.constant 0 : index
      %c0_18 = arith.constant 0 : index
      %c0_19 = arith.constant 0 : index
      %37 = vector.load %arg4[%c0_17, %c0_18, %c0_19] : memref<1x8x128xf32, #tpu.memory_space<vmem>>, vector<1x8x128xf32>
      %38 = vector.shape_cast %37 : vector<1x8x128xf32> to vector<8x128xf32>
      %39 = vector.shape_cast %36 : vector<8x128xf32> to vector<1x8x128xf32>
      tpu.vector_store %arg4[%c0_17, %c0_18, %c0_19], %39 {strides = array<i32>} : memref<1x8x128xf32, #tpu.memory_space<vmem>>, vector<1x8x128xf32>,
      %40 = tpu.iota {dimensions = array<i32: 0>} : vector<128x512xi32>
      %c0_20 = arith.constant 0 : index
      %c0_21 = arith.constant 0 : index
      %41 = vector.load %arg5[%c0_20, %c0_21] : memref<128x512xi32, #tpu.memory_space<vmem>>, vector<128x512xi32>
      tpu.vector_store %arg5[%c0_20, %c0_21], %40 {strides = array<i32>} : memref<128x512xi32, #tpu.memory_space<vmem>>, vector<128x512xi32>,
    } else {
    }
    %c0 = arith.constant 0 : index
    %c0_1 = arith.constant 0 : index
    %c0_2 = arith.constant 0 : index
    %3 = vector.load %arg2[%c0, %c0_1, %c0_2] : memref<1x3x512xi32, #tpu.memory_space<vmem>>, vector<1x3x512xi32>
    %4 = vector.shape_cast %3 : vector<1x3x512xi32> to vector<3x512xi32>
    %5 = vector.extract_strided_slice %4 {offsets = [0, 0], sizes = [1, 512], strides = [1, 1]} : vector<3x512xi32> to vector<1x512xi32>
    %6 = vector.extract_strided_slice %4 {offsets = [1, 0], sizes = [1, 512], strides = [1, 1]} : vector<3x512xi32> to vector<1x512xi32>
    %7 = vector.extract_strided_slice %4 {offsets = [2, 0], sizes = [1, 512], strides = [1, 1]} : vector<3x512xi32> to vector<1x512xi32>
    %8 = tpu.bitcast %7 : vector<1x512xi32> -> vector<1x512xf32>
    %9 = tpu.reciprocal %8 {approx = true} : vector<1x512xf32> -> vector<1x512xf32>
    %10 = arith.mulf %8, %9 : vector<1x512xf32>
    %cst = arith.constant 2.000000e+00 : f32
    %11 = vector.broadcast %cst : f32 to vector<1x512xf32>
    %12 = arith.subf %11, %10 : vector<1x512xf32>
    %13 = arith.mulf %9, %12 : vector<1x512xf32>
    %cst_3 = arith.constant 3.500000e-01 : f32
    %14 = vector.broadcast %cst_3 : f32 to vector<1x512xf32>
    %15 = arith.mulf %13, %14 : vector<1x512xf32>
    %c0_4 = arith.constant 0 : index
    %c0_5 = arith.constant 0 : index
    %16 = vector.load %arg5[%c0_4, %c0_5] : memref<128x512xi32, #tpu.memory_space<vmem>>, vector<128x512xi32>
    %17 = vector.broadcast %5 : vector<1x512xi32> to vector<128x512xi32>
    %18 = arith.cmpi eq, %17, %16 : vector<128x512xi32>
    %19 = arith.extui %18 : vector<128x512xi1> to vector<128x512xi32>
    %20 = arith.sitofp %19 : vector<128x512xi32> to vector<128x512xf32>
    %21 = vector.broadcast %6 : vector<1x512xi32> to vector<128x512xi32>
    %22 = arith.cmpi eq, %21, %16 : vector<128x512xi32>
    %23 = arith.extui %22 : vector<128x512xi1> to vector<128x512xi32>
    %24 = arith.sitofp %23 : vector<128x512xi32> to vector<128x512xf32>
    %c0_6 = arith.constant 0 : index
    %c0_7 = arith.constant 0 : index
    %25 = vector.load %arg3[%c0_6, %c0_7] : memref<8x128xf32, #tpu.memory_space<vmem>>, vector<8x128xf32>
    %cst_8 = arith.constant dense<0.000000e+00> : vector<8x512xf32>
    %26 = tpu.matmul %25, %20, %cst_8 {dimension_numbers = #tpu.dot_dimension_numbers<[1], [0], [0], [1], [0, 0, 1, 1], [], []>} : vector<8x128xf32>, vector<128x512xf32>, vector<8x512xf32> -> vector<8x512xf32>
    %27 = vector.broadcast %15 : vector<1x512xf32> to vector<8x512xf32>
    %28 = arith.mulf %26, %27 : vector<8x512xf32>
    %c0_9 = arith.constant 0 : index
    %c0_10 = arith.constant 0 : index
    %c0_11 = arith.constant 0 : index
    %29 = vector.load %arg4[%c0_9, %c0_10, %c0_11] : memref<1x8x128xf32, #tpu.memory_space<vmem>>, vector<1x8x128xf32>
    %30 = vector.shape_cast %29 : vector<1x8x128xf32> to vector<8x128xf32>
    %cst_12 = arith.constant dense<0.000000e+00> : vector<8x128xf32>
    %31 = tpu.matmul %28, %24, %cst_12 {dimension_numbers = #tpu.dot_dimension_numbers<[1], [1], [0], [0], [0, 0, 1, 0], [], []>} : vector<8x512xf32>, vector<128x512xf32>, vector<8x128xf32> -> vector<8x128xf32>
    %32 = arith.addf %30, %31 : vector<8x128xf32>
    %c0_13 = arith.constant 0 : index
    %c0_14 = arith.constant 0 : index
    %c0_15 = arith.constant 0 : index
    %33 = vector.load %arg4[%c0_13, %c0_14, %c0_15] : memref<1x8x128xf32, #tpu.memory_space<vmem>>, vector<1x8x128xf32>
    %34 = vector.shape_cast %33 : vector<1x8x128xf32> to vector<8x128xf32>
    %35 = vector.shape_cast %32 : vector<8x128xf32> to vector<1x8x128xf32>
    tpu.vector_store %arg4[%c0_13, %c0_14, %c0_15], %35 {strides = array<i32>} : memref<1x8x128xf32, #tpu.memory_space<vmem>>, vector<1x8x128xf32>,
    return
  }
  func.func @transform_0(%arg0: i32, %arg1: i32) -> (i32, i32, i32) {
    %c0_i32 = arith.constant 0 : i32
    %c0_i32_0 = arith.constant 0 : i32
    return %arg0, %c0_i32, %arg1 : i32, i32, i32
  }
  func.func @transform_1(%arg0: i32, %arg1: i32) -> (i32, i32) {
    %c0_i32 = arith.constant 0 : i32
    %c0_i32_0 = arith.constant 0 : i32
    %c0_i32_1 = arith.constant 0 : i32
    return %c0_i32, %c0_i32_0 : i32, i32
  }
  func.func @transform_2(%arg0: i32, %arg1: i32) -> (i32, i32, i32) {
    %c0_i32 = arith.constant 0 : i32
    %c0_i32_0 = arith.constant 0 : i32
    %c0_i32_1 = arith.constant 0 : i32
    return %arg0, %c0_i32, %c0_i32_0 : i32, i32, i32
  }
}

</mosaic_0001>

<bundles_post_ra>
// kernel: tpu_custom_call.1
= control target key start
LH: loop header
LB: loop body
LE: loop exit
PB: predicated region body
PF: predicated region fallthrough
CT: control target
= control target key end

     0   :  { %v17_v0 = vlaneseq  ;;  %s1577_s0 = inlined_call_operand.vmem [shape: s32[1,3,512], index: 0, kind: input, shape index: {}]   ;;  %s1578_s1 = inlined_call_operand.vmem [shape: f32[8,128], index: 1, kind: input, shape index: {}]   ;;  %s1579_s2 = inlined_call_operand.hbm [shape: f32[1,8,128], index: 2, kind: output, shape index: {}]  }
   0x1   :  { %v1093_v1 = vld [vmem:[%s1577_s0 + $0x8] sm:$0x77]  ;;  %v1098_v2 = vld [vmem:[%s1577_s0] sm:$0x77] }
   0x2   :  { %v194_v3 = vperm.slane %v1093_v1, 0  ;;  %v195_v4 = vperm.slane %v1093_v1, 4  ;;  %v192_v5 = vperm.slane %v1098_v2, 0  ;;  %v193_v6 = vperm.slane %v1098_v2, 4 }
   0x3   :  { %7 = vsyncpa [#allocation4], 0  ;;  %v1104_v7 = vshrl.u32 %v17_v0, 7  ;;  %v1073_v16 = vmov 1.0   ;;  %v394_v28 = vperm.slane %v1093_v1, 1  ;;  %v395_v29 = vperm.slane %v1093_v1, 5 }
   0x4   :  { %v1106_v8 = vperm.slane %v194_v3, 0  ;;  %v1108_v9 = vperm.slane %v195_v4, 0  ;;  %v1110_v10 = vperm.slane %v192_v5, 0  ;;  %v1121_v14 = vperm.slane %v193_v6, 0  ;;  %v592_v34 = vld [vmem:[%s1578_s1] sm:$0xff]  ;;  %s1074_s1 = smov [#allocation3]  }
   0x5   :  { %v1113_v11 = vadd.s32 120, %v1104_v7  ;;  %v1116_v12 = vadd.s32 112, %v1104_v7  ;;  %v1119_v13 = vadd.s32 104, %v1104_v7  ;;  %v1130_v15 = vadd.s32 96, %v1104_v7  ;;  %s769_s14 = sshll.u32 %s1074_s1, 4  ;;  %s771_s17 = sshll.u32 %s1579_s2, 4  ;;  %s770_s14 = int_to_ptr.vmem [resolvable:$true] %s769_s14  ;;  %s772_s17 = int_to_ptr.hbm [resolvable:$true] %s771_s17 }
   0x6   :  { %v1137_v17 = vadd.s32 88, %v1104_v7  ;;  %v1158_v18 = vadd.s32 80, %v1104_v7  ;;  %v1175_v19 = vadd.s32 72, %v1104_v7  ;;  %v1190_v20 = vadd.s32 64, %v1104_v7 }
   0x7   :  { %vm262_vm0 = vcmp.eq.s32.totalorder %v1106_v8, %v1113_v11  ;;  %vm258_vm1 = vcmp.eq.s32.totalorder %v1106_v8, %v1116_v12  ;;  %vm263_vm2 = vcmp.eq.s32.totalorder %v1108_v9, %v1113_v11  ;;  %vm259_vm3 = vcmp.eq.s32.totalorder %v1108_v9, %v1116_v12 }
   0x8   :  { %940 = vmatpush.msk.msra.mxu2 %vm262_vm0, %v1073_v16  ;;  %956 = vmatpush.msk.msra.mxu3 %vm263_vm2, %v1073_v16  ;;  %vm254_vm4 = vcmp.eq.s32.totalorder %v1106_v8, %v1119_v13  ;;  %vm255_vm5 = vcmp.eq.s32.totalorder %v1108_v9, %v1119_v13  ;;  %vm260_vm6 = vcmp.eq.s32.totalorder %v1110_v10, %v1113_v11  ;;  %v1205_v21 = vadd.s32 56, %v1104_v7 }
   0x9   :  { %vm261_vm7 = vcmp.eq.s32.totalorder %v1121_v14, %v1113_v11  ;;  %vm256_vm8 = vcmp.eq.s32.totalorder %v1110_v10, %v1116_v12  ;;  %vm250_vm9 = vcmp.eq.s32.totalorder %v1106_v8, %v1130_v15  ;;  %vm251_vm10 = vcmp.eq.s32.totalorder %v1108_v9, %v1130_v15  ;;  %908 = vmatpush.msk.msra.mxu0 %vm260_vm6, %v1073_v16 }
   0xa   :  { %941 = vmatpush.msk.msra.mxu2 %vm258_vm1, %v1073_v16  ;;  %957 = vmatpush.msk.msra.mxu3 %vm259_vm3, %v1073_v16  ;;  %vm257_vm11 = vcmp.eq.s32.totalorder %v1121_v14, %v1116_v12  ;;  %vm252_vm12 = vcmp.eq.s32.totalorder %v1110_v10, %v1119_v13  ;;  %vm253_vm13 = vcmp.eq.s32.totalorder %v1121_v14, %v1119_v13  ;;  %v1220_v22 = vadd.s32 48, %v1104_v7 }
   0xb   :  { %924 = vmatpush.msk.msra.mxu1 %vm261_vm7, %v1073_v16  ;;  %vm246_vm14 = vcmp.eq.s32.totalorder %v1106_v8, %v1137_v17  ;;  %vm247_vm15 = vcmp.eq.s32.totalorder %v1108_v9, %v1137_v17  ;;  %909 = vmatpush.msk.msra.mxu0 %vm256_vm8, %v1073_v16  ;;  %vm248_vm0 = vcmp.eq.s32.totalorder %v1110_v10, %v1130_v15  ;;  %v1235_v23 = vadd.s32 40, %v1104_v7 }
   0xc   :  { %942 = vmatpush.msk.msra.mxu2 %vm254_vm4, %v1073_v16  ;;  %958 = vmatpush.msk.msra.mxu3 %vm255_vm5, %v1073_v16  ;;  %vm249_vm1 = vcmp.eq.s32.totalorder %v1121_v14, %v1130_v15  ;;  %vm242_vm2 = vcmp.eq.s32.totalorder %v1106_v8, %v1158_v18  ;;  %vm243_vm3 = vcmp.eq.s32.totalorder %v1108_v9, %v1158_v18  ;;  %v1250_v24 = vadd.s32 32, %v1104_v7 }
   0xd   :  { %925 = vmatpush.msk.msra.mxu1 %vm257_vm11, %v1073_v16  ;;  %910 = vmatpush.msk.msra.mxu0 %vm252_vm12, %v1073_v16  ;;  %vm244_vm4 = vcmp.eq.s32.totalorder %v1110_v10, %v1137_v17  ;;  %vm245_vm5 = vcmp.eq.s32.totalorder %v1121_v14, %v1137_v17  ;;  %vm238_vm6 = vcmp.eq.s32.totalorder %v1106_v8, %v1175_v19  ;;  %v1265_v25 = vadd.s32 24, %v1104_v7 }
   0xe   :  { %943 = vmatpush.msk.msra.mxu2 %vm250_vm9, %v1073_v16  ;;  %959 = vmatpush.msk.msra.mxu3 %vm251_vm10, %v1073_v16  ;;  %vm239_vm7 = vcmp.eq.s32.totalorder %v1108_v9, %v1175_v19  ;;  %vm240_vm8 = vcmp.eq.s32.totalorder %v1110_v10, %v1158_v18  ;;  %vm241_vm9 = vcmp.eq.s32.totalorder %v1121_v14, %v1158_v18  ;;  %v1280_v26 = vadd.s32 16, %v1104_v7 }
   0xf   :  { %926 = vmatpush.msk.msra.mxu1 %vm253_vm13, %v1073_v16  ;;  %911 = vmatpush.msk.msra.mxu0 %vm248_vm0, %v1073_v16  ;;  %vm234_vm10 = vcmp.eq.s32.totalorder %v1106_v8, %v1190_v20  ;;  %vm235_vm11 = vcmp.eq.s32.totalorder %v1108_v9, %v1190_v20  ;;  %vm236_vm12 = vcmp.eq.s32.totalorder %v1110_v10, %v1175_v19  ;;  %v1295_v27 = vadd.s32 8, %v1104_v7 }
  0x10   :  { %944 = vmatpush.msk.msra.mxu2 %vm246_vm14, %v1073_v16  ;;  %960 = vmatpush.msk.msra.mxu3 %vm247_vm15, %v1073_v16  ;;  %vm237_vm13 = vcmp.eq.s32.totalorder %v1121_v14, %v1175_v19  ;;  %vm230_vm14 = vcmp.eq.s32.totalorder %v1106_v8, %v1205_v21  ;;  %vm231_vm15 = vcmp.eq.s32.totalorder %v1108_v9, %v1205_v21  ;;  %v392_v30 = vperm.slane %v1098_v2, 1 }
  0x11   :  { %927 = vmatpush.msk.msra.mxu1 %vm249_vm1, %v1073_v16  ;;  %912 = vmatpush.msk.msra.mxu0 %vm244_vm4, %v1073_v16  ;;  %vm232_vm0 = vcmp.eq.s32.totalorder %v1110_v10, %v1190_v20  ;;  %vm233_vm1 = vcmp.eq.s32.totalorder %v1121_v14, %v1190_v20  ;;  %vm228_vm4 = vcmp.eq.s32.totalorder %v1110_v10, %v1205_v21  ;;  %v393_v31 = vperm.slane %v1098_v2, 5 }
  0x12   :  { %945 = vmatpush.msk.msra.mxu2 %vm242_vm2, %v1073_v16  ;;  %961 = vmatpush.msk.msra.mxu3 %vm243_vm3, %v1073_v16  ;;  %vm226_vm2 = vcmp.eq.s32.totalorder %v1106_v8, %v1220_v22  ;;  %vm227_vm3 = vcmp.eq.s32.totalorder %v1108_v9, %v1220_v22  ;;  %v1331_v32 = vperm.slane %v394_v28, 1  ;;  %v1333_v33 = vperm.slane %v395_v29, 1 }
  0x13   :  { %928 = vmatpush.msk.msra.mxu1 %vm245_vm5, %v1073_v16  ;;  %913 = vmatpush.msk.msra.mxu0 %vm240_vm8, %v1073_v16  ;;  %vm229_vm5 = vcmp.eq.s32.totalorder %v1121_v14, %v1205_v21  ;;  %vm224_vm8 = vcmp.eq.s32.totalorder %v1110_v10, %v1220_v22  ;;  %v1364_v35 = vperm.slane %v392_v30, 1  ;;  %v1366_v36 = vperm.slane %v393_v31, 1 }
  0x14   :  { %946 = vmatpush.msk.msra.mxu2 %vm238_vm6, %v1073_v16  ;;  %962 = vmatpush.msk.msra.mxu3 %vm239_vm7, %v1073_v16  ;;  %vm222_vm6 = vcmp.eq.s32.totalorder %v1106_v8, %v1235_v23  ;;  %vm223_vm7 = vcmp.eq.s32.totalorder %v1108_v9, %v1235_v23  ;;  %v100_v37 = vperm.slane %v1098_v2, 2  ;;  %v101_v38 = vperm.slane %v1098_v2, 6 }
  0x15   :  { %929 = vmatpush.msk.msra.mxu1 %vm241_vm9, %v1073_v16  ;;  %914 = vmatpush.msk.msra.mxu0 %vm236_vm12, %v1073_v16  ;;  %vm225_vm9 = vcmp.eq.s32.totalorder %v1121_v14, %v1220_v22  ;;  %vm220_vm12 = vcmp.eq.s32.totalorder %v1110_v10, %v1235_v23  ;;  %v102_v39 = vperm.slane %v1093_v1, 2  ;;  %v103_v40 = vperm.slane %v1093_v1, 6 }
  0x16   :  { %947 = vmatpush.msk.msra.mxu2 %vm234_vm10, %v1073_v16  ;;  %963 = vmatpush.msk.msra.mxu3 %vm235_vm11, %v1073_v16  ;;  %vm218_vm10 = vcmp.eq.s32.totalorder %v1106_v8, %v1250_v24  ;;  %vm219_vm11 = vcmp.eq.s32.totalorder %v1108_v9, %v1250_v24  ;;  %1039 = vrcp.f32 %v100_v37 }
  0x17   :  { %930 = vmatpush.msk.msra.mxu1 %vm237_vm13, %v1073_v16  ;;  %915 = vmatpush.msk.msra.mxu0 %vm232_vm0, %v1073_v16  ;;  %vm221_vm13 = vcmp.eq.s32.totalorder %v1121_v14, %v1235_v23  ;;  %vm216_vm0 = vcmp.eq.s32.totalorder %v1110_v10, %v1250_v24  ;;  %1041 = vrcp.f32 %v101_v38 }
  0x18   :  { %948 = vmatpush.msk.msra.mxu2 %vm230_vm14, %v1073_v16  ;;  %964 = vmatpush.msk.msra.mxu3 %vm231_vm15, %v1073_v16  ;;  %vm214_vm14 = vcmp.eq.s32.totalorder %v1106_v8, %v1265_v25  ;;  %vm215_vm15 = vcmp.eq.s32.totalorder %v1108_v9, %v1265_v25  ;;  %1043 = vrcp.f32 %v102_v39 }
  0x19   :  { %931 = vmatpush.msk.msra.mxu1 %vm233_vm1, %v1073_v16  ;;  %916 = vmatpush.msk.msra.mxu0 %vm228_vm4, %v1073_v16  ;;  %vm217_vm1 = vcmp.eq.s32.totalorder %v1121_v14, %v1250_v24  ;;  %vm212_vm4 = vcmp.eq.s32.totalorder %v1110_v10, %v1265_v25  ;;  %1045 = vrcp.f32 %v103_v40 }
  0x1a   :  { %949 = vmatpush.msk.msra.mxu2 %vm226_vm2, %v1073_v16  ;;  %965 = vmatpush.msk.msra.mxu3 %vm227_vm3, %v1073_v16  ;;  %vm210_vm2 = vcmp.eq.s32.totalorder %v1106_v8, %v1280_v26  ;;  %vm211_vm3 = vcmp.eq.s32.totalorder %v1108_v9, %v1280_v26 }
  0x1b   :  { %932 = vmatpush.msk.msra.mxu1 %vm229_vm5, %v1073_v16  ;;  %917 = vmatpush.msk.msra.mxu0 %vm224_vm8, %v1073_v16  ;;  %vm213_vm5 = vcmp.eq.s32.totalorder %v1121_v14, %v1265_v25  ;;  %vm208_vm8 = vcmp.eq.s32.totalorder %v1110_v10, %v1280_v26 }
  0x1c   :  { %950 = vmatpush.msk.msra.mxu2 %vm222_vm6, %v1073_v16  ;;  %966 = vmatpush.msk.msra.mxu3 %vm223_vm7, %v1073_v16  ;;  %vm206_vm6 = vcmp.eq.s32.totalorder %v1106_v8, %v1295_v27  ;;  %vm207_vm7 = vcmp.eq.s32.totalorder %v1108_v9, %v1295_v27  ;;  %v1040_v41 = vpop.eup %1039 }
  0x1d   :  { %933 = vmatpush.msk.msra.mxu1 %vm225_vm9, %v1073_v16  ;;  %918 = vmatpush.msk.msra.mxu0 %vm220_vm12, %v1073_v16  ;;  %vm209_vm9 = vcmp.eq.s32.totalorder %v1121_v14, %v1280_v26  ;;  %vm204_vm12 = vcmp.eq.s32.totalorder %v1110_v10, %v1295_v27  ;;  %v1042_v42 = vpop.eup %1041  ;;  %v112_v45 = vmul.f32 %v1040_v41, %v100_v37 }
  0x1e   :  { %951 = vmatpush.msk.msra.mxu2 %vm218_vm10, %v1073_v16  ;;  %967 = vmatpush.msk.msra.mxu3 %vm219_vm11, %v1073_v16  ;;  %vm202_vm10 = vcmp.eq.s32.totalorder %v1106_v8, %v1104_v7  ;;  %vm203_vm11 = vcmp.eq.s32.totalorder %v1108_v9, %v1104_v7  ;;  %v1044_v43 = vpop.eup %1043  ;;  %v113_v46 = vmul.f32 %v1042_v42, %v101_v38 }
  0x1f   :  { %934 = vmatpush.msk.msra.mxu1 %vm221_vm13, %v1073_v16  ;;  %919 = vmatpush.msk.msra.mxu0 %vm216_vm0, %v1073_v16  ;;  %vm205_vm13 = vcmp.eq.s32.totalorder %v1121_v14, %v1295_v27  ;;  %vm200_vm0 = vcmp.eq.s32.totalorder %v1110_v10, %v1104_v7  ;;  %v1046_v44 = vpop.eup %1045  ;;  %v114_v47 = vmul.f32 %v1044_v43, %v102_v39  ;;  %v116_v49 = vsub.f32 2.0, %v112_v45 }
  0x20   :  { %952 = vmatpush.msk.msra.mxu2 %vm214_vm14, %v1073_v16  ;;  %968 = vmatpush.msk.msra.mxu3 %vm215_vm15, %v1073_v16  ;;  %vm462_vm14 = vcmp.eq.s32.totalorder %v1331_v32, %v1113_v11  ;;  %vm463_vm15 = vcmp.eq.s32.totalorder %v1333_v33, %v1113_v11  ;;  %v115_v48 = vmul.f32 %v1046_v44, %v103_v40  ;;  %v117_v50 = vsub.f32 2.0, %v113_v46 }
  0x21   :  { %935 = vmatpush.msk.msra.mxu1 %vm217_vm1, %v1073_v16  ;;  %920 = vmatpush.msk.msra.mxu0 %vm212_vm4, %v1073_v16  ;;  %vm201_vm1 = vcmp.eq.s32.totalorder %v1121_v14, %v1104_v7  ;;  %vm458_vm4 = vcmp.eq.s32.totalorder %v1331_v32, %v1116_v12  ;;  %v118_v51 = vsub.f32 2.0, %v114_v47  ;;  %v120_v53 = vmul.f32 %v1040_v41, %v116_v49 }
  0x22   :  { %953 = vmatpush.msk.msra.mxu2 %vm210_vm2, %v1073_v16  ;;  %969 = vmatpush.msk.msra.mxu3 %vm211_vm3, %v1073_v16  ;;  %vm460_vm2 = vcmp.eq.s32.totalorder %v1364_v35, %v1113_v11  ;;  %vm461_vm3 = vcmp.eq.s32.totalorder %v1366_v36, %v1113_v11  ;;  %v119_v52 = vsub.f32 2.0, %v115_v48  ;;  %v121_v54 = vmul.f32 %v1042_v42, %v117_v50 }
  0x23   :  { %936 = vmatpush.msk.msra.mxu1 %vm213_vm5, %v1073_v16  ;;  %921 = vmatpush.msk.msra.mxu0 %vm208_vm8, %v1073_v16  ;;  %vm459_vm5 = vcmp.eq.s32.totalorder %v1333_v33, %v1116_v12  ;;  %vm454_vm8 = vcmp.eq.s32.totalorder %v1331_v32, %v1119_v13  ;;  %v122_v55 = vmul.f32 %v1044_v43, %v118_v51  ;;  %v124_v57 = vmul.f32 0.35, %v120_v53 }
  0x24   :  { %954 = vmatpush.msk.msra.mxu2 %vm206_vm6, %v1073_v16  ;;  %970 = vmatpush.msk.msra.mxu3 %vm207_vm7, %v1073_v16  ;;  %vm456_vm6 = vcmp.eq.s32.totalorder %v1364_v35, %v1116_v12  ;;  %vm457_vm7 = vcmp.eq.s32.totalorder %v1366_v36, %v1116_v12  ;;  %v123_v56 = vmul.f32 %v1046_v44, %v119_v52  ;;  %v125_v58 = vmul.f32 0.35, %v121_v54 }
  0x25   :  { %937 = vmatpush.msk.msra.mxu1 %vm209_vm9, %v1073_v16  ;;  %922 = vmatpush.msk.msra.mxu0 %vm204_vm12, %v1073_v16  ;;  %vm455_vm9 = vcmp.eq.s32.totalorder %v1333_v33, %v1119_v13  ;;  %vm450_vm12 = vcmp.eq.s32.totalorder %v1331_v32, %v1130_v15  ;;  %v126_v59 = vmul.f32 0.35, %v122_v55  ;;  %v673_v61 = vperm.slane %v124_v57, 2 }
  0x26   :  { %955 = vmatpush.msk.msra.mxu2 %vm202_vm10, %v1073_v16  ;;  %971 = vmatpush.msk.msra.mxu3 %vm203_vm11, %v1073_v16  ;;  %vm452_vm10 = vcmp.eq.s32.totalorder %v1364_v35, %v1119_v13  ;;  %vm453_vm11 = vcmp.eq.s32.totalorder %v1366_v36, %v1119_v13  ;;  %v127_v60 = vmul.f32 0.35, %v123_v56  ;;  %v674_v62 = vperm.slane %v125_v58, 2 }
  0x27   :  { %649 = vmatmul.f32.vlgmr.msra.gmra.mxu2 %v592_v34  ;;  %669 = vmatmul.f32.vlgmr.msra.gmra.mxu3 %v592_v34  ;;  %v675_v63 = vperm.slane %v126_v59, 2 }
  0x28   :  { %938 = vmatpush.msk.msra.mxu1 %vm205_vm13, %v1073_v16  ;;  %1004 = vmatpush.xpose.msk.msrb.mxu2 %vm462_vm14, %v1073_v16  ;;  %vm451_vm13 = vcmp.eq.s32.totalorder %v1333_v33, %v1130_v15  ;;  %vm448_vm14 = vcmp.eq.s32.totalorder %v1364_v35, %v1130_v15  ;;  %v676_v0 = vperm.slane %v127_v60, 2 }
  0x29   :  { %1020 = vmatpush.xpose.msk.msrb.mxu3 %vm463_vm15, %v1073_v16  ;;  %923 = vmatpush.msk.msra.mxu0 %vm200_vm0, %v1073_v16  ;;  %vm449_vm15 = vcmp.eq.s32.totalorder %v1366_v36, %v1130_v15  ;;  %vm446_vm0 = vcmp.eq.s32.totalorder %v1331_v32, %v1137_v17 }
  0x2a   :  { %939 = vmatpush.msk.msra.mxu1 %vm201_vm1, %v1073_v16  ;;  %609 = vmatmul.f32.vlgmr.msra.gmra.mxu0 %v592_v34  ;;  %vm447_vm1 = vcmp.eq.s32.totalorder %v1333_v33, %v1137_v17 }
  0x2b   :  { %629 = vmatmul.f32.vlgmr.msra.gmra.mxu1 %v592_v34  ;;  %972 = vmatpush.xpose.msk.msrb.mxu0 %vm460_vm2, %v1073_v16  ;;  %vm444_vm2 = vcmp.eq.s32.totalorder %v1364_v35, %v1137_v17 }
  0x2c   :  { %988 = vmatpush.xpose.msk.msrb.mxu1 %vm461_vm3, %v1073_v16  ;;  %1005 = vmatpush.xpose.msk.msrb.mxu2 %vm458_vm4, %v1073_v16  ;;  %vm445_vm3 = vcmp.eq.s32.totalorder %v1366_v36, %v1137_v17  ;;  %vm442_vm4 = vcmp.eq.s32.totalorder %v1331_v32, %v1158_v18 }
  0x2d   :  { %1021 = vmatpush.xpose.msk.msrb.mxu3 %vm459_vm5, %v1073_v16  ;;  %vm443_vm5 = vcmp.eq.s32.totalorder %v1333_v33, %v1158_v18 }
  0x2f   :  { %973 = vmatpush.xpose.msk.msrb.mxu0 %vm456_vm6, %v1073_v16  ;;  %vm440_vm6 = vcmp.eq.s32.totalorder %v1364_v35, %v1158_v18 }
  0x30   :  { %989 = vmatpush.xpose.msk.msrb.mxu1 %vm457_vm7, %v1073_v16  ;;  %1006 = vmatpush.xpose.msk.msrb.mxu2 %vm454_vm8, %v1073_v16  ;;  %vm441_vm7 = vcmp.eq.s32.totalorder %v1366_v36, %v1158_v18  ;;  %vm438_vm8 = vcmp.eq.s32.totalorder %v1331_v32, %v1175_v19 }
  0x31   :  { %1022 = vmatpush.xpose.msk.msrb.mxu3 %vm455_vm9, %v1073_v16  ;;  %vm439_vm9 = vcmp.eq.s32.totalorder %v1333_v33, %v1175_v19 }
  0x33   :  { %974 = vmatpush.xpose.msk.msrb.mxu0 %vm452_vm10, %v1073_v16  ;;  %vm436_vm10 = vcmp.eq.s32.totalorder %v1364_v35, %v1175_v19 }
  0x34   :  { %990 = vmatpush.xpose.msk.msrb.mxu1 %vm453_vm11, %v1073_v16  ;;  %1007 = vmatpush.xpose.msk.msrb.mxu2 %vm450_vm12, %v1073_v16  ;;  %vm437_vm11 = vcmp.eq.s32.totalorder %v1366_v36, %v1175_v19  ;;  %vm434_vm12 = vcmp.eq.s32.totalorder %v1331_v32, %v1190_v20 }
  0x35   :  { %1023 = vmatpush.xpose.msk.msrb.mxu3 %vm451_vm13, %v1073_v16  ;;  %vm435_vm13 = vcmp.eq.s32.totalorder %v1333_v33, %v1190_v20 }
  0x37   :  { %975 = vmatpush.xpose.msk.msrb.mxu0 %vm448_vm14, %v1073_v16  ;;  %vm432_vm14 = vcmp.eq.s32.totalorder %v1364_v35, %v1190_v20 }
  0x38   :  { %991 = vmatpush.xpose.msk.msrb.mxu1 %vm449_vm15, %v1073_v16  ;;  %1008 = vmatpush.xpose.msk.msrb.mxu2 %vm446_vm0, %v1073_v16  ;;  %vm433_vm15 = vcmp.eq.s32.totalorder %v1366_v36, %v1190_v20  ;;  %vm430_vm0 = vcmp.eq.s32.totalorder %v1331_v32, %v1205_v21 }
  0x39   :  { %1024 = vmatpush.xpose.msk.msrb.mxu3 %vm447_vm1, %v1073_v16  ;;  %vm431_vm1 = vcmp.eq.s32.totalorder %v1333_v33, %v1205_v21 }
  0x3b   :  { %976 = vmatpush.xpose.msk.msrb.mxu0 %vm444_vm2, %v1073_v16  ;;  %vm428_vm2 = vcmp.eq.s32.totalorder %v1364_v35, %v1205_v21 }
  0x3c   :  { %992 = vmatpush.xpose.msk.msrb.mxu1 %vm445_vm3, %v1073_v16  ;;  %1009 = vmatpush.xpose.msk.msrb.mxu2 %vm442_vm4, %v1073_v16  ;;  %vm429_vm3 = vcmp.eq.s32.totalorder %v1366_v36, %v1205_v21  ;;  %vm426_vm4 = vcmp.eq.s32.totalorder %v1331_v32, %v1220_v22 }
  0x3d   :  { %1025 = vmatpush.xpose.msk.msrb.mxu3 %vm443_vm5, %v1073_v16  ;;  %vm427_vm5 = vcmp.eq.s32.totalorder %v1333_v33, %v1220_v22 }
  0x3f   :  { %977 = vmatpush.xpose.msk.msrb.mxu0 %vm440_vm6, %v1073_v16  ;;  %vm424_vm6 = vcmp.eq.s32.totalorder %v1364_v35, %v1220_v22 }
  0x40   :  { %993 = vmatpush.xpose.msk.msrb.mxu1 %vm441_vm7, %v1073_v16  ;;  %1010 = vmatpush.xpose.msk.msrb.mxu2 %vm438_vm8, %v1073_v16  ;;  %vm425_vm7 = vcmp.eq.s32.totalorder %v1366_v36, %v1220_v22  ;;  %vm422_vm8 = vcmp.eq.s32.totalorder %v1331_v32, %v1235_v23 }
  0x41   :  { %1026 = vmatpush.xpose.msk.msrb.mxu3 %vm439_vm9, %v1073_v16  ;;  %vm423_vm9 = vcmp.eq.s32.totalorder %v1333_v33, %v1235_v23 }
  0x43   :  { %978 = vmatpush.xpose.msk.msrb.mxu0 %vm436_vm10, %v1073_v16  ;;  %vm420_vm10 = vcmp.eq.s32.totalorder %v1364_v35, %v1235_v23 }
  0x44   :  { %994 = vmatpush.xpose.msk.msrb.mxu1 %vm437_vm11, %v1073_v16  ;;  %1011 = vmatpush.xpose.msk.msrb.mxu2 %vm434_vm12, %v1073_v16  ;;  %vm421_vm11 = vcmp.eq.s32.totalorder %v1366_v36, %v1235_v23  ;;  %vm418_vm12 = vcmp.eq.s32.totalorder %v1331_v32, %v1250_v24 }
  0x45   :  { %1027 = vmatpush.xpose.msk.msrb.mxu3 %vm435_vm13, %v1073_v16  ;;  %vm419_vm13 = vcmp.eq.s32.totalorder %v1333_v33, %v1250_v24 }
  0x47   :  { %979 = vmatpush.xpose.msk.msrb.mxu0 %vm432_vm14, %v1073_v16  ;;  %vm416_vm14 = vcmp.eq.s32.totalorder %v1364_v35, %v1250_v24 }
  0x48   :  { %995 = vmatpush.xpose.msk.msrb.mxu1 %vm433_vm15, %v1073_v16  ;;  %1012 = vmatpush.xpose.msk.msrb.mxu2 %vm430_vm0, %v1073_v16  ;;  %vm417_vm15 = vcmp.eq.s32.totalorder %v1366_v36, %v1250_v24  ;;  %vm414_vm0 = vcmp.eq.s32.totalorder %v1331_v32, %v1265_v25 }
  0x49   :  { %1028 = vmatpush.xpose.msk.msrb.mxu3 %vm431_vm1, %v1073_v16  ;;  %vm415_vm1 = vcmp.eq.s32.totalorder %v1333_v33, %v1265_v25 }
  0x4b   :  { %980 = vmatpush.xpose.msk.msrb.mxu0 %vm428_vm2, %v1073_v16  ;;  %vm412_vm2 = vcmp.eq.s32.totalorder %v1364_v35, %v1265_v25 }
  0x4c   :  { %996 = vmatpush.xpose.msk.msrb.mxu1 %vm429_vm3, %v1073_v16  ;;  %1013 = vmatpush.xpose.msk.msrb.mxu2 %vm426_vm4, %v1073_v16  ;;  %vm413_vm3 = vcmp.eq.s32.totalorder %v1366_v36, %v1265_v25  ;;  %vm410_vm4 = vcmp.eq.s32.totalorder %v1331_v32, %v1280_v26 }
  0x4d   :  { %1029 = vmatpush.xpose.msk.msrb.mxu3 %vm427_vm5, %v1073_v16  ;;  %vm411_vm5 = vcmp.eq.s32.totalorder %v1333_v33, %v1280_v26 }
  0x4f   :  { %981 = vmatpush.xpose.msk.msrb.mxu0 %vm424_vm6, %v1073_v16  ;;  %vm408_vm6 = vcmp.eq.s32.totalorder %v1364_v35, %v1280_v26 }
  0x50   :  { %997 = vmatpush.xpose.msk.msrb.mxu1 %vm425_vm7, %v1073_v16  ;;  %1014 = vmatpush.xpose.msk.msrb.mxu2 %vm422_vm8, %v1073_v16  ;;  %vm409_vm7 = vcmp.eq.s32.totalorder %v1366_v36, %v1280_v26  ;;  %vm406_vm8 = vcmp.eq.s32.totalorder %v1331_v32, %v1295_v27 }
  0x51   :  { %1030 = vmatpush.xpose.msk.msrb.mxu3 %vm423_vm9, %v1073_v16  ;;  %vm407_vm9 = vcmp.eq.s32.totalorder %v1333_v33, %v1295_v27 }
  0x53   :  { %982 = vmatpush.xpose.msk.msrb.mxu0 %vm420_vm10, %v1073_v16  ;;  %vm404_vm10 = vcmp.eq.s32.totalorder %v1364_v35, %v1295_v27 }
  0x54   :  { %998 = vmatpush.xpose.msk.msrb.mxu1 %vm421_vm11, %v1073_v16  ;;  %1015 = vmatpush.xpose.msk.msrb.mxu2 %vm418_vm12, %v1073_v16  ;;  %vm405_vm11 = vcmp.eq.s32.totalorder %v1366_v36, %v1295_v27  ;;  %vm402_vm12 = vcmp.eq.s32.totalorder %v1331_v32, %v1104_v7 }
  0x55   :  { %1031 = vmatpush.xpose.msk.msrb.mxu3 %vm419_vm13, %v1073_v16  ;;  %vm403_vm13 = vcmp.eq.s32.totalorder %v1333_v33, %v1104_v7 }
  0x57   :  { %983 = vmatpush.xpose.msk.msrb.mxu0 %vm416_vm14, %v1073_v16  ;;  %vm400_vm14 = vcmp.eq.s32.totalorder %v1364_v35, %v1104_v7 }
  0x58   :  { %999 = vmatpush.xpose.msk.msrb.mxu1 %vm417_vm15, %v1073_v16  ;;  %1016 = vmatpush.xpose.msk.msrb.mxu2 %vm414_vm0, %v1073_v16  ;;  %vm401_vm15 = vcmp.eq.s32.totalorder %v1366_v36, %v1104_v7 }
  0x59   :  { %1032 = vmatpush.xpose.msk.msrb.mxu3 %vm415_vm1, %v1073_v16 }
  0x5b   :  { %984 = vmatpush.xpose.msk.msrb.mxu0 %vm412_vm2, %v1073_v16 }
  0x5c   :  { %1000 = vmatpush.xpose.msk.msrb.mxu1 %vm413_vm3, %v1073_v16  ;;  %1017 = vmatpush.xpose.msk.msrb.mxu2 %vm410_vm4, %v1073_v16 }
  0x5d   :  { %1033 = vmatpush.xpose.msk.msrb.mxu3 %vm411_vm5, %v1073_v16 }
  0x5f   :  { %985 = vmatpush.xpose.msk.msrb.mxu0 %vm408_vm6, %v1073_v16 }
  0x60   :  { %1001 = vmatpush.xpose.msk.msrb.mxu1 %vm409_vm7, %v1073_v16  ;;  %1018 = vmatpush.xpose.msk.msrb.mxu2 %vm406_vm8, %v1073_v16 }
  0x61   :  { %1034 = vmatpush.xpose.msk.msrb.mxu3 %vm407_vm9, %v1073_v16 }
  0x63   :  { %986 = vmatpush.xpose.msk.msrb.mxu0 %vm404_vm10, %v1073_v16 }
  0x64   :  { %1002 = vmatpush.xpose.msk.msrb.mxu1 %vm405_vm11, %v1073_v16  ;;  %1019 = vmatpush.xpose.msk.msrb.mxu2 %vm402_vm12, %v1073_v16 }
  0x65   :  { %1035 = vmatpush.xpose.msk.msrb.mxu3 %vm403_vm13, %v1073_v16 }
  0x67   :  { %987 = vmatpush.xpose.msk.msrb.mxu0 %vm400_vm14, %v1073_v16 }
  0x68   :  { %1003 = vmatpush.xpose.msk.msrb.mxu1 %vm401_vm15, %v1073_v16 }
  0xa7   :  { %v610_v1 = vpop.f32.mrf.mxu0 }
  0xa8   :  { %v630_v2 = vpop.f32.mrf.mxu1  ;;  %v677_v3 = vmul.f32 %v673_v61, %v610_v1 }
  0xa9   :  { %v678_v4 = vmul.f32 %v674_v62, %v630_v2 }
  0xaa   :  { %v650_v5 = vpop.f32.mrf.mxu2  ;;  %v670_v6 = vpop.f32.mrf.mxu3  ;;  %698 = vmatmul.f32.vlgmr.msrb.gmra.mxu0 %v677_v3 }
  0xab   :  { %v679_v7 = vmul.f32 %v675_v63, %v650_v5  ;;  %v680_v8 = vmul.f32 %v676_v0, %v670_v6  ;;  %718 = vmatmul.f32.vlgmr.msrb.gmra.mxu1 %v678_v4 }
  0xad   :  { %738 = vmatmul.f32.vlgmr.msrb.gmra.mxu2 %v679_v7  ;;  %758 = vmatmul.f32.vlgmr.msrb.gmra.mxu3 %v680_v8 }
 0x127   :  { %v699_v9 = vpop.f32.mrf.mxu0 }
 0x128   :  { %v719_v10 = vpop.f32.mrf.mxu1 }
 0x129   :  { %v720_v11 = vadd.f32 %v719_v10, %v699_v9 }
 0x130   :  { %v739_v12 = vpop.f32.mrf.mxu2  ;;  %v759_v13 = vpop.f32.mrf.mxu3 }
 0x131   :  { %v740_v14 = vadd.f32 %v739_v12, %v720_v11 }
 0x133   :  { %v760_v15 = vadd.f32 %v759_v13, %v740_v14 }
 0x135   :  { %763 = vst [vmem:[#allocation3] sm:$0xff] %v760_v15 }
 0x136   :  { %774 = dma.vmem_to_hbm [thread:$0]  %s770_s14, 128, %s772_s17, [#allocation4]  }
 0x137   :  { %1071 = dma.done.wait [#allocation4], 128  }
 0x138   :  { %1072 = vsyncadd [#allocation4], 4294967168 }
 0x139   :  { %779 = vsyncpa [#allocation4], 1 }

</bundles_post_ra>
